<compile_context>
chip_gen: v7x
topology: tpu7x:2x2x1
jax: 0.10.0
libtpu: 0.0.40
codegen_flags: <defaults>
</compile_context>

<pallas_src>
import jax
import jax.numpy as jnp
from jax.experimental import pallas as pl
from jax.experimental.pallas import tpu as pltpu

# rgb -> yuv matrix (same constants as the reference AnimeGAN rgb_to_yuv).
_K = [
    [0.299, -0.14714119, 0.61497538],
    [0.587, -0.28886916, -0.51496512],
    [0.114, 0.43601035, -0.10001026],
]
# 0.5 from the (x+1)/2 normalization folded into the mixing constants
# (the difference (x+1)/2 - (xg+1)/2 == 0.5*(x - xg), and the mix is linear).
_KY = (0.5 * _K[0][0], 0.5 * _K[1][0], 0.5 * _K[2][0])
_KU = (0.5 * _K[0][1], 0.5 * _K[1][1], 0.5 * _K[2][1])
_KV = (0.5 * _K[0][2], 0.5 * _K[1][2], 0.5 * _K[2][2])

_TM_MAX = 2048                      # pixel rows (of 128 lanes) per grid step
_VMEM_LIMIT = 48 * 1024 * 1024      # explicit scoped-VMEM limit (safe on v5e..v7x)


def _make_color_loss_kernel(bb, tm, tps, t_tiles, rows8, needs_mask):
    """Kernel factory; all arguments are trace-time Python ints / bools."""

    def kernel(img_ref, img_g_ref, out_ref, acc_ref):
        # img_ref / img_g_ref : (bb, 3, tm, 128) block of the (B, 3, rows8, 128) inputs
        # out_ref             : (1, 1, 8, 128) lane-dense partial-sum tile
        # acc_ref             : (8, 128) f32 running accumulator (VMEM scratch)
        t = pl.program_id(2)

        @pl.when(t == 0)
        def _():
            acc_ref[...] = jnp.zeros_like(acc_ref)

        # Per-channel differences sliced straight off the refs (no whole-block
        # cast temporaries); the (x+1)/2 offsets cancel in the difference and
        # the 0.5 is folded into the constants below.
        dr = img_ref[:, 0].astype(jnp.float32) - img_g_ref[:, 0].astype(jnp.float32)
        dg = img_ref[:, 1].astype(jnp.float32) - img_g_ref[:, 1].astype(jnp.float32)
        db = img_ref[:, 2].astype(jnp.float32) - img_g_ref[:, 2].astype(jnp.float32)

        dy = _KY[0] * dr + _KY[1] * dg + _KY[2] * db
        du = _KU[0] * dr + _KU[1] * dg + _KU[2] * db
        dv = _KV[0] * dr + _KV[1] * dg + _KV[2] * db

        # L1 on Y; SmoothL1 (Huber, beta=1) on U and V.
        ady = jnp.abs(dy)
        adu = jnp.abs(du)
        adv = jnp.abs(dv)
        loss = (
            ady
            + jnp.where(adu < 1.0, 0.5 * du * du, adu - 0.5)
            + jnp.where(adv < 1.0, 0.5 * dv * dv, adv - 0.5)
        )  # (bb, tm, 128)

        if needs_mask:
            # Ragged last pixel tile and/or virtual tiles from the two-way
            # split: zero out rows that are not backed by real data.
            g = pl.program_id(1) * tps + t              # global pixel-tile index
            n_valid = jnp.clip(rows8 - g * tm, 0, tm)   # rows of this tile in-bounds
            row_ids = jax.lax.broadcasted_iota(jnp.int32, loss.shape, loss.ndim - 2)
            loss = jnp.where(row_ids < n_valid, loss, 0.0)

        # Fold into the (8,128) accumulator with plain VPU adds (no per-step
        # cross-lane reduce).  bb*tm is always a multiple of 8.
        acc_ref[...] += loss.reshape(-1, 8, 128).sum(axis=0)

        @pl.when(t == tps - 1)
        def _():
            out_ref[...] = acc_ref[...].reshape(1, 1, 8, 128)

    return kernel


def color_loss(image, image_g, *, tm_max=_TM_MAX):
    """image, image_g: NCHW arrays of shape (B, 3, H, W), values in [-1, 1]."""
    assert image.shape == image_g.shape
    B, C, H, W = image.shape
    assert C == 3
    hw = H * W

    # Free reshape: (B, 3, H, W) -> (B, 3, H*W).  No transpose, no dtype cast.
    x = image.reshape(B, 3, hw)
    xg = image_g.reshape(B, 3, hw)

    # Round the pixel count up to a whole number of (8, 128) vreg tiles.  For
    # typical image sizes hw is already a multiple of 1024 and this pad is a
    # no-op; when it does fire, the padded pixels are zero in BOTH images and
    # contribute exactly 0 to the loss sum.
    rows = -(-hw // 128)                 # cdiv(hw, 128)
    rows8 = ((rows + 7) // 8) * 8        # multiple of 8 (sublane tile)
    pad = rows8 * 128 - hw
    if pad:
        x = jnp.pad(x, ((0, 0), (0, 0), (0, pad)))
        xg = jnp.pad(xg, ((0, 0), (0, 0), (0, pad)))
    x = x.reshape(B, 3, rows8, 128)
    xg = xg.reshape(B, 3, rows8, 128)

    # --- Tile / blocking selection (all trace-time Python ints) ---------------
    tm_cap = max(8, (int(tm_max) // 8) * 8)
    if rows8 >= tm_cap:
        tm, bb = tm_cap, 1
    else:
        tm = rows8                       # one step covers a full image's pixels
        bb = 1
        for cand in (8, 4, 2):           # pack several batch entries per block
            if B % cand == 0 and cand * tm <= tm_cap:
                bb = cand
                break
    nb = B // bb                                   # batch blocks
    t_tiles = -(-rows8 // tm)                      # pixel tiles per batch row
    ns = 2 if (nb % 2 == 1 and t_tiles >= 2) else 1  # megacore split (v7x)
    tps = -(-t_tiles // ns)                        # tiles per split
    needs_mask = (rows8 != t_tiles * tm) or (ns * tps != t_tiles)

    def in_index_map(b, s, t):
        g = s * tps + t
        if ns * tps != t_tiles:
            g = jnp.minimum(g, t_tiles - 1)        # clamp virtual tiles (masked to 0)
        return (b, 0, g, 0)

    grid = (nb, ns, tps)
    kernel = _make_color_loss_kernel(bb, tm, tps, t_tiles, rows8, needs_mask)

    itemsize = jnp.dtype(x.dtype).itemsize
    cost = pl.CostEstimate(
        flops=35 * B * rows8 * 128,
        transcendentals=0,
        bytes_accessed=2 * B * 3 * rows8 * 128 * itemsize + nb * ns * 8 * 128 * 4,
    )

    partial = pl.pallas_call(
        kernel,
        out_shape=jax.ShapeDtypeStruct((nb, ns, 8, 128), jnp.float32),
        grid_spec=pltpu.PrefetchScalarGridSpec(
            num_scalar_prefetch=0,
            grid=grid,
            in_specs=[
                pl.BlockSpec((bb, 3, tm, 128), in_index_map),
                pl.BlockSpec((bb, 3, tm, 128), in_index_map),
            ],
            out_specs=pl.BlockSpec((1, 1, 8, 128), lambda b, s, t: (b, s, 0, 0)),
            scratch_shapes=[pltpu.VMEM((8, 128), jnp.float32)],
        ),
        compiler_params=pltpu.CompilerParams(
            dimension_semantics=("parallel", "parallel", "arbitrary"),
            vmem_limit_bytes=_VMEM_LIMIT,
        ),
        cost_estimate=cost,
    )(x, xg)

    # Each of the three losses is a mean over B*H*W elements, so the sum of the
    # three means equals the combined sum divided by B*H*W (padding / masked
    # rows contribute 0).
    return jnp.sum(partial) / jnp.float32(B * hw)


def _reference_color_loss(image, image_g):
    """Pure-JAX reference matching the PyTorch module."""
    k = jnp.array(_K, dtype=jnp.float32)

    def rgb_to_yuv(t):
        t = (t.astype(jnp.float32) + 1.0) / 2.0
        return jnp.tensordot(t, k, axes=([1], [0]))  # (B, H, W, 3)

    a = rgb_to_yuv(image)
    b = rgb_to_yuv(image_g)

    def huber(d):
        ad = jnp.abs(d)
        return jnp.mean(jnp.where(ad < 1.0, 0.5 * d * d, ad - 0.5))

    return (
        jnp.mean(jnp.abs(a[..., 0] - b[..., 0]))
        + huber(a[..., 1] - b[..., 1])
        + huber(a[..., 2] - b[..., 2])
    )


if __name__ == "__main__":
    key = jax.random.PRNGKey(0)
    # Small deterministic configs; tm_max is shrunk on two of them purely to
    # exercise, at small sizes, the same code paths a large image hits with the
    # default tm_max=2048: ragged last pixel tile, virtual tiles from the
    # two-way (v7x) split, and batch blocking.
    configs = [
        ((2, 3, 16, 16), _TM_MAX),  # default path, batch-blocked, single tile
        ((2, 3, 48, 48), 16),       # ragged last pixel tile (in-kernel row mask)
        ((1, 3, 68, 68), 8),        # B=1 -> two-way split, odd tile count -> virtual tile
    ]
    for shape, tm_max in configs:
        key, k1, k2 = jax.random.split(key, 3)
        # Images in [-1, 1] as expected by rgb_to_yuv's (x+1)/2 normalization.
        image = jax.random.uniform(k1, shape, jnp.float32, -1.0, 1.0)
        image_g = jax.random.uniform(k2, shape, jnp.float32, -1.0, 1.0)

        out = jax.block_until_ready(color_loss(image, image_g, tm_max=tm_max))
        ref = _reference_color_loss(image, image_g)
        assert jnp.allclose(out, ref, rtol=1e-4, atol=1e-6), (shape, tm_max, out, ref)

    print("KERNEL_OK")
</pallas_src>

<mosaic_0001>
module attributes {stable_mosaic.version = 11 : i64} {
  func.func @kernel(%arg0: i32, %arg1: i32, %arg2: i32, %arg3: memref<2x3x8x128xf32, #tpu.memory_space<vmem>>, %arg4: memref<2x3x8x128xf32, #tpu.memory_space<vmem>>, %arg5: memref<1x1x8x128xf32, #tpu.memory_space<vmem>>, %arg6: memref<8x128xf32, #tpu.memory_space<vmem>>) attributes {dimension_semantics = [#tpu.dimension_semantics<parallel>, #tpu.dimension_semantics<parallel>, #tpu.dimension_semantics<arbitrary>], iteration_bounds = array<i64: 1, 1, 1>, scalar_prefetch = 0 : i64, scratch_operands = 1 : i64, tpu.core_type = #tpu.core_type<tc>, window_params = [{transform_indices = @transform_0, window_bounds = array<i64: 2, 3, 8, 128>}, {transform_indices = @transform_1, window_bounds = array<i64: 2, 3, 8, 128>}, {transform_indices = @transform_2, window_bounds = array<i64: 1, 1, 8, 128>}]} {
    %c0_i32 = arith.constant 0 : i32
    %0 = arith.cmpi eq, %arg2, %c0_i32 : i32
    %1 = arith.extui %0 : i1 to i32
    %c0_i32_0 = arith.constant 0 : i32
    %2 = arith.cmpi ne, %1, %c0_i32_0 : i32
    scf.if %2 {
      %cst_43 = arith.constant 0.000000e+00 : f32
      %70 = vector.broadcast %cst_43 : f32 to vector<8x128xf32>
      %c0_44 = arith.constant 0 : index
      %c0_45 = arith.constant 0 : index
      %71 = vector.load %arg6[%c0_44, %c0_45] : memref<8x128xf32, #tpu.memory_space<vmem>>, vector<8x128xf32>
      tpu.vector_store %arg6[%c0_44, %c0_45], %70 {strides = array<i32>} : memref<8x128xf32, #tpu.memory_space<vmem>>, vector<8x128xf32>,
    } else {
    }
    %c0 = arith.constant 0 : index
    %c0_1 = arith.constant 0 : index
    %c0_2 = arith.constant 0 : index
    %c0_3 = arith.constant 0 : index
    %3 = vector.load %arg3[%c0, %c0_1, %c0_2, %c0_3] : memref<2x3x8x128xf32, #tpu.memory_space<vmem>>, vector<2x1x8x128xf32>
    %4 = vector.shape_cast %3 : vector<2x1x8x128xf32> to vector<2x8x128xf32>
    %c0_4 = arith.constant 0 : index
    %c0_5 = arith.constant 0 : index
    %c0_6 = arith.constant 0 : index
    %c0_7 = arith.constant 0 : index
    %5 = vector.load %arg4[%c0_4, %c0_5, %c0_6, %c0_7] : memref<2x3x8x128xf32, #tpu.memory_space<vmem>>, vector<2x1x8x128xf32>
    %6 = vector.shape_cast %5 : vector<2x1x8x128xf32> to vector<2x8x128xf32>
    %7 = arith.subf %4, %6 : vector<2x8x128xf32>
    %c0_8 = arith.constant 0 : index
    %c1 = arith.constant 1 : index
    %c0_9 = arith.constant 0 : index
    %c0_10 = arith.constant 0 : index
    %8 = vector.load %arg3[%c0_8, %c1, %c0_9, %c0_10] : memref<2x3x8x128xf32, #tpu.memory_space<vmem>>, vector<2x1x8x128xf32>
    %9 = vector.shape_cast %8 : vector<2x1x8x128xf32> to vector<2x8x128xf32>
    %c0_11 = arith.constant 0 : index
    %c1_12 = arith.constant 1 : index
    %c0_13 = arith.constant 0 : index
    %c0_14 = arith.constant 0 : index
    %10 = vector.load %arg4[%c0_11, %c1_12, %c0_13, %c0_14] : memref<2x3x8x128xf32, #tpu.memory_space<vmem>>, vector<2x1x8x128xf32>
    %11 = vector.shape_cast %10 : vector<2x1x8x128xf32> to vector<2x8x128xf32>
    %12 = arith.subf %9, %11 : vector<2x8x128xf32>
    %c0_15 = arith.constant 0 : index
    %c2 = arith.constant 2 : index
    %c0_16 = arith.constant 0 : index
    %c0_17 = arith.constant 0 : index
    %13 = vector.load %arg3[%c0_15, %c2, %c0_16, %c0_17] : memref<2x3x8x128xf32, #tpu.memory_space<vmem>>, vector<2x1x8x128xf32>
    %14 = vector.shape_cast %13 : vector<2x1x8x128xf32> to vector<2x8x128xf32>
    %c0_18 = arith.constant 0 : index
    %c2_19 = arith.constant 2 : index
    %c0_20 = arith.constant 0 : index
    %c0_21 = arith.constant 0 : index
    %15 = vector.load %arg4[%c0_18, %c2_19, %c0_20, %c0_21] : memref<2x3x8x128xf32, #tpu.memory_space<vmem>>, vector<2x1x8x128xf32>
    %16 = vector.shape_cast %15 : vector<2x1x8x128xf32> to vector<2x8x128xf32>
    %17 = arith.subf %14, %16 : vector<2x8x128xf32>
    %cst = arith.constant 1.495000e-01 : f32
    %18 = vector.broadcast %cst : f32 to vector<2x8x128xf32>
    %19 = arith.mulf %18, %7 : vector<2x8x128xf32>
    %cst_22 = arith.constant 2.935000e-01 : f32
    %20 = vector.broadcast %cst_22 : f32 to vector<2x8x128xf32>
    %21 = arith.mulf %20, %12 : vector<2x8x128xf32>
    %22 = arith.addf %19, %21 : vector<2x8x128xf32>
    %cst_23 = arith.constant 5.700000e-02 : f32
    %23 = vector.broadcast %cst_23 : f32 to vector<2x8x128xf32>
    %24 = arith.mulf %23, %17 : vector<2x8x128xf32>
    %25 = arith.addf %22, %24 : vector<2x8x128xf32>
    %cst_24 = arith.constant -0.0735705942 : f32
    %26 = vector.broadcast %cst_24 : f32 to vector<2x8x128xf32>
    %27 = arith.mulf %26, %7 : vector<2x8x128xf32>
    %cst_25 = arith.constant -0.144434586 : f32
    %28 = vector.broadcast %cst_25 : f32 to vector<2x8x128xf32>
    %29 = arith.mulf %28, %12 : vector<2x8x128xf32>
    %30 = arith.addf %27, %29 : vector<2x8x128xf32>
    %cst_26 = arith.constant 0.21800518 : f32
    %31 = vector.broadcast %cst_26 : f32 to vector<2x8x128xf32>
    %32 = arith.mulf %31, %17 : vector<2x8x128xf32>
    %33 = arith.addf %30, %32 : vector<2x8x128xf32>
    %cst_27 = arith.constant 0.307487696 : f32
    %34 = vector.broadcast %cst_27 : f32 to vector<2x8x128xf32>
    %35 = arith.mulf %34, %7 : vector<2x8x128xf32>
    %cst_28 = arith.constant -0.257482558 : f32
    %36 = vector.broadcast %cst_28 : f32 to vector<2x8x128xf32>
    %37 = arith.mulf %36, %12 : vector<2x8x128xf32>
    %38 = arith.addf %35, %37 : vector<2x8x128xf32>
    %cst_29 = arith.constant -0.0500051305 : f32
    %39 = vector.broadcast %cst_29 : f32 to vector<2x8x128xf32>
    %40 = arith.mulf %39, %17 : vector<2x8x128xf32>
    %41 = arith.addf %38, %40 : vector<2x8x128xf32>
    %42 = math.absf %25 : vector<2x8x128xf32>
    %43 = math.absf %33 : vector<2x8x128xf32>
    %44 = math.absf %41 : vector<2x8x128xf32>
    %cst_30 = arith.constant 1.000000e+00 : f32
    %45 = vector.broadcast %cst_30 : f32 to vector<2x8x128xf32>
    %46 = arith.cmpf olt, %43, %45 : vector<2x8x128xf32>
    %cst_31 = arith.constant 5.000000e-01 : f32
    %47 = vector.broadcast %cst_31 : f32 to vector<2x8x128xf32>
    %48 = arith.mulf %47, %33 : vector<2x8x128xf32>
    %49 = arith.mulf %48, %33 : vector<2x8x128xf32>
    %cst_32 = arith.constant 5.000000e-01 : f32
    %50 = vector.broadcast %cst_32 : f32 to vector<2x8x128xf32>
    %51 = arith.subf %43, %50 : vector<2x8x128xf32>
    %52 = arith.select %46, %49, %51 : vector<2x8x128xi1>, vector<2x8x128xf32>
    %53 = arith.addf %42, %52 : vector<2x8x128xf32>
    %cst_33 = arith.constant 1.000000e+00 : f32
    %54 = vector.broadcast %cst_33 : f32 to vector<2x8x128xf32>
    %55 = arith.cmpf olt, %44, %54 : vector<2x8x128xf32>
    %cst_34 = arith.constant 5.000000e-01 : f32
    %56 = vector.broadcast %cst_34 : f32 to vector<2x8x128xf32>
    %57 = arith.mulf %56, %41 : vector<2x8x128xf32>
    %58 = arith.mulf %57, %41 : vector<2x8x128xf32>
    %cst_35 = arith.constant 5.000000e-01 : f32
    %59 = vector.broadcast %cst_35 : f32 to vector<2x8x128xf32>
    %60 = arith.subf %44, %59 : vector<2x8x128xf32>
    %61 = arith.select %55, %58, %60 : vector<2x8x128xi1>, vector<2x8x128xf32>
    %62 = arith.addf %53, %61 : vector<2x8x128xf32>
    %c0_36 = arith.constant 0 : index
    %c0_37 = arith.constant 0 : index
    %63 = vector.load %arg6[%c0_36, %c0_37] : memref<8x128xf32, #tpu.memory_space<vmem>>, vector<8x128xf32>
    %cst_38 = arith.constant dense<0.000000e+00> : vector<8x128xf32>
    %64 = vector.multi_reduction <add>, %62, %cst_38 [0] : vector<2x8x128xf32> to vector<8x128xf32>
    %65 = arith.addf %63, %64 : vector<8x128xf32>
    %c0_39 = arith.constant 0 : index
    %c0_40 = arith.constant 0 : index
    %66 = vector.load %arg6[%c0_39, %c0_40] : memref<8x128xf32, #tpu.memory_space<vmem>>, vector<8x128xf32>
    tpu.vector_store %arg6[%c0_39, %c0_40], %65 {strides = array<i32>} : memref<8x128xf32, #tpu.memory_space<vmem>>, vector<8x128xf32>,
    %c0_i32_41 = arith.constant 0 : i32
    %67 = arith.cmpi eq, %arg2, %c0_i32_41 : i32
    %68 = arith.extui %67 : i1 to i32
    %c0_i32_42 = arith.constant 0 : i32
    %69 = arith.cmpi ne, %68, %c0_i32_42 : i32
    scf.if %69 {
      %c0_43 = arith.constant 0 : index
      %c0_44 = arith.constant 0 : index
      %70 = vector.load %arg6[%c0_43, %c0_44] : memref<8x128xf32, #tpu.memory_space<vmem>>, vector<8x128xf32>
      %71 = vector.shape_cast %70 : vector<8x128xf32> to vector<1x1x8x128xf32>
      %c0_45 = arith.constant 0 : index
      %c0_46 = arith.constant 0 : index
      %c0_47 = arith.constant 0 : index
      %c0_48 = arith.constant 0 : index
      %72 = vector.load %arg5[%c0_45, %c0_46, %c0_47, %c0_48] : memref<1x1x8x128xf32, #tpu.memory_space<vmem>>, vector<1x1x8x128xf32>
      tpu.vector_store %arg5[%c0_45, %c0_46, %c0_47, %c0_48], %71 {strides = array<i32>} : memref<1x1x8x128xf32, #tpu.memory_space<vmem>>, vector<1x1x8x128xf32>,
    } else {
    }
    return
  }
  func.func @transform_0(%arg0: i32, %arg1: i32, %arg2: i32) -> (i32, i32, i32, i32) {
    %c1_i32 = arith.constant 1 : i32
    %0 = arith.muli %arg1, %c1_i32 : i32
    %1 = arith.addi %0, %arg2 : i32
    %c0_i32 = arith.constant 0 : i32
    %c0_i32_0 = arith.constant 0 : i32
    %c0_i32_1 = arith.constant 0 : i32
    return %arg0, %c0_i32, %1, %c0_i32_0 : i32, i32, i32, i32
  }
  func.func @transform_1(%arg0: i32, %arg1: i32, %arg2: i32) -> (i32, i32, i32, i32) {
    %c1_i32 = arith.constant 1 : i32
    %0 = arith.muli %arg1, %c1_i32 : i32
    %1 = arith.addi %0, %arg2 : i32
    %c0_i32 = arith.constant 0 : i32
    %c0_i32_0 = arith.constant 0 : i32
    %c0_i32_1 = arith.constant 0 : i32
    return %arg0, %c0_i32, %1, %c0_i32_0 : i32, i32, i32, i32
  }
  func.func @transform_2(%arg0: i32, %arg1: i32, %arg2: i32) -> (i32, i32, i32, i32) {
    %c0_i32 = arith.constant 0 : i32
    %c0_i32_0 = arith.constant 0 : i32
    %c0_i32_1 = arith.constant 0 : i32
    return %arg0, %arg1, %c0_i32, %c0_i32_0 : i32, i32, i32, i32
  }
}

</mosaic_0001>

<bundles_post_ra>
// kernel: tpu_custom_call.1
= control target key start
LH: loop header
LB: loop body
LE: loop exit
PB: predicated region body
PF: predicated region fallthrough
CT: control target
= control target key end

     0   :  { %7 = vsyncpa [#allocation4], 0  ;;  %s297_s0 = inlined_call_operand.hbm [shape: f32[2,3,8,128], index: 0, kind: input, shape index: {}]   ;;  %s298_s1 = inlined_call_operand.hbm [shape: f32[2,3,8,128], index: 1, kind: input, shape index: {}]   ;;  %s299_s2 = inlined_call_operand.hbm [shape: f32[1,1,8,128], index: 2, kind: output, shape index: {}]  }
   0x1   :  { %8 = vsyncpa [#allocation7], 0 }
   0x2   :  { %9 = vsyncpa [#allocation5], 0  ;;  %s241_s9 = smov [#allocation3]   ;;  %s169_s13 = scalar_lea.hbm %s297_s0, 768 }
   0x3   :  { %s18_s10 = sshll.u32 %s241_s9, 4  ;;  %p170_p0 = scmp.ne.s32.totalorder %s297_s0, %s169_s13  ;;  %s19_s10 = int_to_ptr.vmem [resolvable:$true] %s18_s10 }
   0x4   :  { %p173_p1 = scmp.lt.u32.totalorder %s169_s13, %s297_s0 }
   0x6   :  { %p175_p2 = pnand %p173_p1, %p170_p0 }
   0x8   :  { %178 = shalt.err (!%p175_p2)
}
   0x9   :  { %s179_s18 = scalar_lea.vmem %s19_s10, 768  ;;  %p184_p4 = scmp.lt.s32.totalorder %s19_s10, %s19_s10 }
   0xa   :  { %p180_p3 = scmp.ne.s32.totalorder %s19_s10, %s179_s18  ;;  %p185_p5 = scmp.lt.s32.totalorder %s179_s18, %s179_s18 }
   0xc   :  { %p186_p6 = por %p185_p5, %p184_p4 }
   0xe   :  { %p187_p7 = pnand %p186_p6, %p180_p3 }
  0x10   :  { %190 = shalt.err (!%p187_p7)
}
  0x11   :  { %s242_s19 = smov 128   ;;  %s243_s20 = smov 8  }
  0x12   :  { %24 = dma.hbm_to_vmem [thread:$0]  %s297_s0, 768, %s19_s10, [#allocation4], %s242_s19, %s242_s19, %s243_s20  }
  0x13   :  { %s244_s23 = smov [#allocation6]   ;;  %s191_s27 = scalar_lea.hbm %s298_s1, 768 }
  0x14   :  { %s33_s24 = sshll.u32 %s244_s23, 4  ;;  %p192_p8 = scmp.ne.s32.totalorder %s298_s1, %s191_s27  ;;  %s34_s24 = int_to_ptr.vmem [resolvable:$true] %s33_s24 }
  0x15   :  { %p195_p9 = scmp.lt.u32.totalorder %s191_s27, %s298_s1 }
  0x17   :  { %p197_p10 = pnand %p195_p9, %p192_p8 }
  0x19   :  { %200 = shalt.err (!%p197_p10)
}
  0x1a   :  { %s201_s4 = scalar_lea.vmem %s34_s24, 768  ;;  %p206_p12 = scmp.lt.s32.totalorder %s34_s24, %s34_s24 }
  0x1b   :  { %p202_p11 = scmp.ne.s32.totalorder %s34_s24, %s201_s4  ;;  %p207_p13 = scmp.lt.s32.totalorder %s201_s4, %s201_s4 }
  0x1d   :  { %p208_p0 = por %p207_p13, %p206_p12 }
  0x1f   :  { %p209_p1 = pnand %p208_p0, %p202_p11 }
  0x21   :  { %212 = shalt.err (!%p209_p1)
}
  0x22   :  { %39 = dma.hbm_to_vmem [thread:$0]  %s298_s1, 768, %s34_s24, [#allocation7], %s242_s19, %s242_s19, %s243_s20  }
  0x23   :  { %235 = dma.done.wait [#allocation4], 768  }
  0x24   :  { %236 = vsyncadd [#allocation4], 4294966528 }
  0x25   :  { %237 = dma.done.wait [#allocation7], 768  }
  0x26   :  { %238 = vsyncadd [#allocation7], 4294966528  ;;  %v53_v0 = vld [vmem:[#allocation3] sm:$0xff]  ;;  %v54_v1 = vld [vmem:[#allocation3 + $0x18] sm:$0xff]  ;;  %s245_s1 = smov [#allocation8]  }
  0x27   :  { %v55_v2 = vld [vmem:[#allocation6] sm:$0xff]  ;;  %v56_v3 = vld [vmem:[#allocation6 + $0x18] sm:$0xff]  ;;  %v61_v6 = vld [vmem:[#allocation3 + $0x20] sm:$0xff]  ;;  %s150_s6 = sshll.u32 %s245_s1, 4  ;;  %s151_s6 = int_to_ptr.vmem [resolvable:$true] %s150_s6 }
  0x28   :  { %v57_v4 = vsub.f32 %v53_v0, %v55_v2  ;;  %v60_v5 = vld [vmem:[#allocation3 + $0x8] sm:$0xff]  ;;  %v58_v7 = vsub.f32 %v54_v1, %v56_v3  ;;  %v63_v8 = vld [vmem:[#allocation6 + $0x8] sm:$0xff]  ;;  %v64_v9 = vld [vmem:[#allocation6 + $0x20] sm:$0xff]  ;;  %s213_s7 = scalar_lea.vmem %s151_s6, 128  ;;  %p218_p3 = scmp.lt.s32.totalorder %s151_s6, %s151_s6 }
  0x29   :  { %v68_v10 = vld [vmem:[#allocation3 + $0x10] sm:$0xff]  ;;  %v65_v11 = vsub.f32 %v60_v5, %v63_v8  ;;  %v66_v12 = vsub.f32 %v61_v6, %v64_v9  ;;  %v69_v13 = vld [vmem:[#allocation3 + $0x28] sm:$0xff]  ;;  %v71_v14 = vld [vmem:[#allocation6 + $0x10] sm:$0xff]  ;;  %p214_p2 = scmp.ne.s32.totalorder %s151_s6, %s213_s7  ;;  %p219_p4 = scmp.lt.s32.totalorder %s213_s7, %s213_s7 }
  0x2a   :  { %v72_v15 = vld [vmem:[#allocation6 + $0x28] sm:$0xff]  ;;  %v75_v16 = vmul.f32 0.1495, %v57_v4  ;;  %v73_v17 = vsub.f32 %v68_v10, %v71_v14  ;;  %v76_v19 = vmul.f32 0.1495, %v58_v7 }
  0x2b   :  { %v74_v18 = vsub.f32 %v69_v13, %v72_v15  ;;  %v85_v20 = vmul.f32 -0.073570594, %v57_v4  ;;  %v77_v21 = vmul.f32 0.2935, %v65_v11  ;;  %v78_v22 = vmul.f32 0.2935, %v66_v12  ;;  %p220_p5 = por %p219_p4, %p218_p3 }
  0x2c   :  { %v86_v23 = vmul.f32 -0.073570594, %v58_v7  ;;  %v81_v24 = vmul.f32 0.057, %v73_v17  ;;  %v87_v26 = vmul.f32 -0.14443459, %v65_v11 }
  0x2d   :  { %v82_v25 = vmul.f32 0.057, %v74_v18  ;;  %v79_v27 = vadd.f32 %v77_v21, %v75_v16  ;;  %v80_v28 = vadd.f32 %v78_v22, %v76_v19  ;;  %v88_v29 = vmul.f32 -0.14443459, %v66_v12  ;;  %p221_p6 = pnand %p220_p5, %p214_p2 }
  0x2e   :  { %v91_v30 = vmul.f32 0.21800518, %v73_v17  ;;  %v89_v31 = vadd.f32 %v87_v26, %v85_v20  ;;  %v92_v32 = vmul.f32 0.21800518, %v74_v18  ;;  %v95_v33 = vmul.f32 0.3074877, %v57_v4 }
  0x2f   :  { %v96_v34 = vmul.f32 0.3074877, %v58_v7  ;;  %v83_v35 = vadd.f32 %v81_v24, %v79_v27  ;;  %v84_v36 = vadd.f32 %v82_v25, %v80_v28  ;;  %v90_v37 = vadd.f32 %v88_v29, %v86_v23 }
  0x30   :  { %v97_v38 = vmul.f32 -0.25748256, %v65_v11  ;;  %v93_v39 = vadd.f32 %v91_v30, %v89_v31  ;;  %v98_v40 = vmul.f32 -0.25748256, %v66_v12  ;;  %v101_v41 = vmul.f32 -0.05000513, %v73_v17 }
  0x31   :  { %v102_v42 = vmul.f32 -0.05000513, %v74_v18  ;;  %v94_v43 = vadd.f32 %v92_v32, %v90_v37  ;;  %v105_v46 = vand.u32 2147483647, %v83_v35  ;;  %v106_v50 = vand.u32 2147483647, %v84_v36 }
  0x32   :  { %v99_v44 = vadd.f32 %v97_v38, %v95_v33  ;;  %v100_v45 = vadd.f32 %v98_v40, %v96_v34  ;;  %v107_v47 = vand.u32 2147483647, %v93_v39  ;;  %v113_v48 = vmul.f32 0.5, %v93_v39 }
  0x33   :  { %v108_v51 = vand.u32 2147483647, %v94_v43  ;;  %v114_v52 = vmul.f32 0.5, %v94_v43 }
  0x34   :  { %v103_v49 = vadd.f32 %v101_v41, %v99_v44  ;;  %v104_v53 = vadd.f32 %v102_v42, %v100_v45  ;;  %vm111_vm0 = vcmp.lt.f32.partialorder %v107_v47, 1.0  ;;  %v115_v54 = vmul.f32 %v113_v48, %v93_v39 }
  0x35   :  { %v160_v55 = vadd.f32 -0.5, %v107_v47  ;;  %vm112_vm1 = vcmp.lt.f32.partialorder %v108_v51, 1.0  ;;  %v116_v57 = vmul.f32 %v114_v52, %v94_v43  ;;  %v161_v58 = vadd.f32 -0.5, %v108_v51 }
  0x36   :  { %v109_v56 = vand.u32 2147483647, %v103_v49  ;;  %v110_v59 = vand.u32 2147483647, %v104_v53  ;;  %v125_v61 = vmul.f32 0.5, %v103_v49  ;;  %v126_v62 = vmul.f32 0.5, %v104_v53 }
  0x37   :  { %v119_v60 = vsel %vm111_vm0, %v115_v54, %v160_v55  ;;  %v120_v63 = vsel %vm112_vm1, %v116_v57, %v161_v58 }
  0x38   :  { %v121_v0 = vadd.f32 %v119_v60, %v105_v46  ;;  %vm123_vm2 = vcmp.lt.f32.partialorder %v109_v56, 1.0  ;;  %v162_v1 = vadd.f32 -0.5, %v109_v56  ;;  %v122_v2 = vadd.f32 %v120_v63, %v106_v50 }
  0x39   :  { %vm124_vm3 = vcmp.lt.f32.partialorder %v110_v59, 1.0  ;;  %v127_v3 = vmul.f32 %v125_v61, %v103_v49  ;;  %v128_v4 = vmul.f32 %v126_v62, %v104_v53  ;;  %v163_v5 = vadd.f32 -0.5, %v110_v59 }
  0x3b   :  { %v131_v6 = vsel %vm123_vm2, %v127_v3, %v162_v1  ;;  %v132_v7 = vsel %vm124_vm3, %v128_v4, %v163_v5 }
  0x3c   :  { %v133_v8 = vadd.f32 %v131_v6, %v121_v0  ;;  %v134_v9 = vadd.f32 %v132_v7, %v122_v2 }
  0x3e   :  { %v136_v10 = vadd.f32 %v134_v9, %v133_v8 }
  0x40   :  { %143 = vst [vmem:[#allocation8] sm:$0xff] %v136_v10 }
  0x41   :  { %224 = shalt.err (!%p221_p6)
}
  0x42   :  { %s225_s10 = scalar_lea.hbm %s299_s2, 128 }
  0x43   :  { %p226_p7 = scmp.ne.s32.totalorder %s299_s2, %s225_s10  ;;  %p229_p8 = scmp.lt.u32.totalorder %s225_s10, %s299_s2 }
  0x45   :  { %p231_p9 = pnand %p229_p8, %p226_p7 }
  0x47   :  { %234 = shalt.err (!%p231_p9)
}
  0x48   :  { %153 = dma.vmem_to_hbm [thread:$0]  %s151_s6, 128, %s299_s2, [#allocation5]  }
  0x49   :  { %239 = dma.done.wait [#allocation5], 128  }
  0x4a   :  { %240 = vsyncadd [#allocation5], 4294967168 }
  0x4b   :  { %157 = vsyncpa [#allocation4], 1 }
  0x4c   :  { %158 = vsyncpa [#allocation7], 1 }
  0x4d   :  { %159 = vsyncpa [#allocation5], 1 }

</bundles_post_ra>
